<compile_context>
chip_gen: v7x
topology: tpu7x:2x2x1
jax: 0.10.0
libtpu: 0.0.40
codegen_flags: <defaults>
</compile_context>

<pallas_src>
import math
from typing import NamedTuple, Optional

import jax
import jax.numpy as jnp
from jax.experimental import pallas as pl
from jax.experimental.pallas import tpu as pltpu


def _sigmoid(x):
    # sigmoid(x) = 0.5 * (tanh(x/2) + 1): keeps the transcendental on the EUP
    # slot instead of adding a VALU divide to the serial epilogue.
    return 0.5 * (jnp.tanh(0.5 * x) + 1.0)


def _nbytes(shape, dtype):
    return math.prod(shape) * jnp.dtype(dtype).itemsize


# ---------------------------------------------------------------------------
# One-time parameter packing (feedback: repack at param-prep time, not per call)
# ---------------------------------------------------------------------------
class LSTMParams(NamedTuple):
    w_cat: jax.Array  # (I+H, 4H)  fused [x; h] weight for the single step
    w_ih: jax.Array   # (I,   4H)  input projection (sequence pre-pass)
    w_hh: jax.Array   # (H,   4H)  recurrent weight
    b: jax.Array      # (1,   4H)  b_ih + b_hh, kept in f32


def pack_lstm_params(w_ih, w_hh, b_ih, b_hh,
                     param_dtype: Optional[jnp.dtype] = None) -> LSTMParams:
    """Repack raw LSTMCell parameters once.

    param_dtype: optionally cast the weights (e.g. jnp.bfloat16) to halve the
    resident VMEM footprint and the one-time HBM DMA for large H (e.g. on
    v7x with 64 MiB VMEM).  The matmuls still accumulate in f32.
    """
    if param_dtype is not None:
        w_ih = w_ih.astype(param_dtype)
        w_hh = w_hh.astype(param_dtype)
    w_cat = jnp.concatenate([w_ih, w_hh], axis=0)              # (I+H, 4H)
    b = (b_ih.astype(jnp.float32) + b_hh.astype(jnp.float32)).reshape(1, -1)
    return LSTMParams(w_cat=w_cat, w_ih=w_ih, w_hh=w_hh, b=b)


# ---------------------------------------------------------------------------
# Single-step kernel: one fused (B, I+H) x (I+H, 4H) MXU dot, N = 4H.
# ---------------------------------------------------------------------------
def _lstm_cell_kernel(xh_ref, c0_ref, w_ref, b_ref, h1_ref, c1_ref):
    c0 = c0_ref[...].astype(jnp.float32)        # (B, H)
    H = c0.shape[-1]

    xh = xh_ref[...]                            # (B, I+H)
    w = w_ref[...]                              # (I+H, 4H)
    if xh.dtype != w.dtype:                     # trace-time static branch
        xh = xh.astype(w.dtype)

    gates = jnp.dot(xh, w, preferred_element_type=jnp.float32) + b_ref[...]
    f = gates[:, 0 * H:1 * H]
    i = gates[:, 1 * H:2 * H]
    o = gates[:, 2 * H:3 * H]
    g = gates[:, 3 * H:4 * H]

    c1 = _sigmoid(f) * c0 + _sigmoid(i) * jnp.tanh(g)
    h1 = _sigmoid(o) * jnp.tanh(c1)
    h1_ref[...] = h1.astype(h1_ref.dtype)
    c1_ref[...] = c1.astype(c1_ref.dtype)


def lstm_cell(x, h0, c0, params: LSTMParams):
    """Single LSTM step; matches LSTMCell.forward(input_, (h0, c0))."""
    B, H = h0.shape
    xh = jnp.concatenate([x, h0], axis=1)                       # (B, I+H)

    full = lambda a: pl.BlockSpec(a.shape, lambda: (0,) * a.ndim)
    h1, c1 = pl.pallas_call(
        _lstm_cell_kernel,
        out_shape=(jax.ShapeDtypeStruct((B, H), x.dtype),
                   jax.ShapeDtypeStruct((B, H), x.dtype)),
        in_specs=[full(xh), full(c0), full(params.w_cat), full(params.b)],
        out_specs=(pl.BlockSpec((B, H), lambda: (0, 0)),
                   pl.BlockSpec((B, H), lambda: (0, 0))),
    )(xh, c0, params.w_cat, params.b)
    return h1, c1


# ---------------------------------------------------------------------------
# Sequence kernel: grid over chunks of Tc timesteps.
#   * per chunk: x-projection of all Tc steps as one big MXU dot (M = Tc*B),
#     bias folded in once;
#   * serial recurrence: one fused (B, H) x (H, 4H) dot per step;
#   * weights stay resident in VMEM across all chunks; h/c carried in f32
#     scratch; outputs stored only on the last chunk.
# ---------------------------------------------------------------------------
def _lstm_seq_kernel(x_ref, h0_ref, c0_ref, wih_ref, whh_ref, b_ref,
                     h_out_ref, c_out_ref, h_sc, c_sc):
    s = pl.program_id(0)

    @pl.when(s == 0)
    def _():
        h_sc[...] = h0_ref[...].astype(jnp.float32)
        c_sc[...] = c0_ref[...].astype(jnp.float32)

    Tc, B, I = x_ref.shape
    H = h_sc.shape[-1]

    w_ih = wih_ref[...]                          # (I, 4H)  resident
    w_hh = whh_ref[...]                          # (H, 4H)  resident

    # ---- pre-pass: project the whole chunk's inputs in one MXU dot --------
    x_flat = x_ref[...].reshape(Tc * B, I)
    if x_flat.dtype != w_ih.dtype:               # static branch
        x_flat = x_flat.astype(w_ih.dtype)
    xp = (jnp.dot(x_flat, w_ih, preferred_element_type=jnp.float32)
          + b_ref[...])                          # bias folded once per chunk
    xp = xp.reshape(Tc, B, 4 * H)

    # ---- serial recurrence -------------------------------------------------
    h = h_sc[...]                                # (B, H) f32 carried state
    c = c_sc[...]
    for t in range(Tc):                          # static unroll (Tc small)
        hh = h if h.dtype == w_hh.dtype else h.astype(w_hh.dtype)
        gates = xp[t] + jnp.dot(hh, w_hh, preferred_element_type=jnp.float32)
        f = gates[:, 0 * H:1 * H]
        i = gates[:, 1 * H:2 * H]
        o = gates[:, 2 * H:3 * H]
        g = gates[:, 3 * H:4 * H]
        c = _sigmoid(f) * c + _sigmoid(i) * jnp.tanh(g)
        h = _sigmoid(o) * jnp.tanh(c)

    h_sc[...] = h
    c_sc[...] = c

    # Cast + store only once, at the end of the last chunk.
    @pl.when(s == pl.num_programs(0) - 1)
    def _():
        h_out_ref[...] = h.astype(h_out_ref.dtype)
        c_out_ref[...] = c.astype(c_out_ref.dtype)


def _choose_chunk(T, chunk):
    chunk = max(1, min(chunk, T))
    while T % chunk:
        chunk -= 1
    return chunk


def lstm_cell_seq(xs, h0, c0, params: LSTMParams, *, chunk=16):
    """Run the cell over xs (T, B, I); returns final (h_T, c_T).

    Reference behavior: the hidden/cell state is carried in f32 VMEM scratch
    across all steps (so with bf16 I/O it will NOT bit-match T repeated
    single-step calls that round-trip the state through bf16 HBM).
    """
    T, B, I = xs.shape
    H = h0.shape[-1]
    Tc = _choose_chunk(T, chunk)
    n_chunks = T // Tc

    w_ih, w_hh, b = params.w_ih, params.w_hh, params.b

    # Explicit VMEM budget: streamed x chunk + (default double-buffered)
    # resident operands + outputs + scratch + f32 x-projection temporaries.
    est = (2 * _nbytes((Tc, B, I), xs.dtype)
           + 2 * (_nbytes(w_ih.shape, w_ih.dtype)
                  + _nbytes(w_hh.shape, w_hh.dtype)
                  + _nbytes(b.shape, b.dtype))
           + 2 * (_nbytes((B, H), h0.dtype) + _nbytes((B, H), c0.dtype))
           + 4 * _nbytes((B, H), xs.dtype)
           + 2 * _nbytes((B, H), jnp.float32)
           + 2 * _nbytes((Tc * B, 4 * H), jnp.float32))
    vmem_limit = int(min(64 * 1024 * 1024, max(16 * 1024 * 1024, 2 * est)))

    res = lambda a: pl.BlockSpec(a.shape, lambda s: (0,) * a.ndim)
    hT, cT = pl.pallas_call(
        _lstm_seq_kernel,
        grid=(n_chunks,),
        out_shape=(jax.ShapeDtypeStruct((B, H), xs.dtype),
                   jax.ShapeDtypeStruct((B, H), xs.dtype)),
        in_specs=[pl.BlockSpec((Tc, B, I), lambda s: (s, 0, 0)),  # stream x
                  res(h0), res(c0),
                  res(w_ih), res(w_hh), res(b)],                  # resident
        out_specs=(pl.BlockSpec((B, H), lambda s: (0, 0)),
                   pl.BlockSpec((B, H), lambda s: (0, 0))),
        scratch_shapes=[pltpu.VMEM((B, H), jnp.float32),
                        pltpu.VMEM((B, H), jnp.float32)],
        compiler_params=pltpu.CompilerParams(
            dimension_semantics=("arbitrary",),   # sequential carried state
            vmem_limit_bytes=vmem_limit),
    )(xs, h0, c0, w_ih, w_hh, b)
    return hT, cT


# ---------------------------------------------------------------------------
# Pure-JAX references
# ---------------------------------------------------------------------------
def lstm_cell_ref(x, h0, c0, w_ih, w_hh, b_ih, b_hh):
    gates = x @ w_ih + h0 @ w_hh + b_ih[None, :] + b_hh[None, :]
    f, i, o, g = jnp.split(gates, 4, axis=1)
    c1 = jax.nn.sigmoid(f) * c0 + jax.nn.sigmoid(i) * jnp.tanh(g)
    h1 = jax.nn.sigmoid(o) * jnp.tanh(c1)
    return h1, c1


def lstm_seq_ref(xs, h0, c0, w_ih, w_hh, b_ih, b_hh):
    def step(carry, x):
        h, c = carry
        h1, c1 = lstm_cell_ref(x, h, c, w_ih, w_hh, b_ih, b_hh)
        return (h1, c1), None
    (hT, cT), _ = jax.lax.scan(step, (h0, c0), xs)
    return hT, cT


if __name__ == "__main__":
    # Small but hardware-friendly shapes: B multiple of 8 sublanes, H a
    # multiple of 128 lanes (so the 4 gate slices are 128-aligned).
    B, I, H, T = 8, 64, 128, 16

    key = jax.random.PRNGKey(0)
    k_x, k_h, k_c, k_wih, k_seq = jax.random.split(key, 5)

    # Deterministic parameters mirroring reset_parameters():
    #   weight_ih: random (stand-in for orthogonal init),
    #   weight_hh: eye repeated 4x, biases: zeros.
    w_ih = jax.random.normal(k_wih, (I, 4 * H), dtype=jnp.float32) * 0.1
    w_hh = jnp.tile(jnp.eye(H, dtype=jnp.float32), (1, 4))
    b_ih = jnp.zeros((4 * H,), dtype=jnp.float32)
    b_hh = jnp.zeros((4 * H,), dtype=jnp.float32)

    x = jax.random.normal(k_x, (B, I), dtype=jnp.float32)
    h0 = jax.random.normal(k_h, (B, H), dtype=jnp.float32)
    c0 = jax.random.normal(k_c, (B, H), dtype=jnp.float32)
    xs = jax.random.normal(k_seq, (T, B, I), dtype=jnp.float32)

    # One-time parameter repack (use param_dtype=jnp.bfloat16 for large H).
    params = pack_lstm_params(w_ih, w_hh, b_ih, b_hh, param_dtype=None)

    # Single step (the module's forward).
    h1, c1 = jax.block_until_ready(lstm_cell(x, h0, c0, params))
    h1_ref, c1_ref = lstm_cell_ref(x, h0, c0, w_ih, w_hh, b_ih, b_hh)
    assert jnp.allclose(h1, h1_ref, atol=1e-5, rtol=1e-5)
    assert jnp.allclose(c1, c1_ref, atol=1e-5, rtol=1e-5)

    # Sequence variant (time loop inside the kernel, Tc timesteps per chunk).
    hT, cT = jax.block_until_ready(lstm_cell_seq(xs, h0, c0, params, chunk=8))
    hT_ref, cT_ref = lstm_seq_ref(xs, h0, c0, w_ih, w_hh, b_ih, b_hh)
    assert jnp.allclose(hT, hT_ref, atol=1e-4, rtol=1e-4)
    assert jnp.allclose(cT, cT_ref, atol=1e-4, rtol=1e-4)

    print("KERNEL_OK")
</pallas_src>

<mosaic_0001>
module attributes {stable_mosaic.version = 11 : i64} {
  func.func @_lstm_cell_kernel(%arg0: memref<8x192xf32, #tpu.memory_space<vmem>>, %arg1: memref<8x128xf32, #tpu.memory_space<vmem>>, %arg2: memref<192x512xf32, #tpu.memory_space<vmem>>, %arg3: memref<1x512xf32, #tpu.memory_space<vmem>>, %arg4: memref<8x128xf32, #tpu.memory_space<vmem>>, %arg5: memref<8x128xf32, #tpu.memory_space<vmem>>) attributes {dimension_semantics = [], scalar_prefetch = 0 : i64, scratch_operands = 0 : i64, tpu.core_type = #tpu.core_type<tc>} {
    %c0 = arith.constant 0 : index
    %c0_0 = arith.constant 0 : index
    %0 = vector.load %arg1[%c0, %c0_0] : memref<8x128xf32, #tpu.memory_space<vmem>>, vector<8x128xf32>
    %c0_1 = arith.constant 0 : index
    %c0_2 = arith.constant 0 : index
    %1 = vector.load %arg0[%c0_1, %c0_2] : memref<8x192xf32, #tpu.memory_space<vmem>>, vector<8x192xf32>
    %c0_3 = arith.constant 0 : index
    %c0_4 = arith.constant 0 : index
    %2 = vector.load %arg2[%c0_3, %c0_4] : memref<192x512xf32, #tpu.memory_space<vmem>>, vector<192x512xf32>
    %cst = arith.constant dense<0.000000e+00> : vector<8x512xf32>
    %3 = tpu.matmul %1, %2, %cst {dimension_numbers = #tpu.dot_dimension_numbers<[1], [0], [0], [1], [0, 0, 1, 1], [], []>} : vector<8x192xf32>, vector<192x512xf32>, vector<8x512xf32> -> vector<8x512xf32>
    %c0_5 = arith.constant 0 : index
    %c0_6 = arith.constant 0 : index
    %4 = vector.load %arg3[%c0_5, %c0_6] : memref<1x512xf32, #tpu.memory_space<vmem>>, vector<1x512xf32>
    %5 = vector.broadcast %4 : vector<1x512xf32> to vector<8x512xf32>
    %6 = arith.addf %3, %5 : vector<8x512xf32>
    %7 = vector.extract_strided_slice %6 {offsets = [0, 0], sizes = [8, 128], strides = [1, 1]} : vector<8x512xf32> to vector<8x128xf32>
    %8 = vector.extract_strided_slice %6 {offsets = [0, 128], sizes = [8, 128], strides = [1, 1]} : vector<8x512xf32> to vector<8x128xf32>
    %9 = vector.extract_strided_slice %6 {offsets = [0, 256], sizes = [8, 128], strides = [1, 1]} : vector<8x512xf32> to vector<8x128xf32>
    %10 = vector.extract_strided_slice %6 {offsets = [0, 384], sizes = [8, 128], strides = [1, 1]} : vector<8x512xf32> to vector<8x128xf32>
    %cst_7 = arith.constant 5.000000e-01 : f32
    %11 = vector.broadcast %cst_7 : f32 to vector<8x128xf32>
    %12 = arith.mulf %11, %7 : vector<8x128xf32>
    %13 = math.tanh %12 : vector<8x128xf32>
    %cst_8 = arith.constant 1.000000e+00 : f32
    %14 = vector.broadcast %cst_8 : f32 to vector<8x128xf32>
    %15 = arith.addf %13, %14 : vector<8x128xf32>
    %cst_9 = arith.constant 5.000000e-01 : f32
    %16 = vector.broadcast %cst_9 : f32 to vector<8x128xf32>
    %17 = arith.mulf %16, %15 : vector<8x128xf32>
    %18 = arith.mulf %17, %0 : vector<8x128xf32>
    %cst_10 = arith.constant 5.000000e-01 : f32
    %19 = vector.broadcast %cst_10 : f32 to vector<8x128xf32>
    %20 = arith.mulf %19, %8 : vector<8x128xf32>
    %21 = math.tanh %20 : vector<8x128xf32>
    %cst_11 = arith.constant 1.000000e+00 : f32
    %22 = vector.broadcast %cst_11 : f32 to vector<8x128xf32>
    %23 = arith.addf %21, %22 : vector<8x128xf32>
    %cst_12 = arith.constant 5.000000e-01 : f32
    %24 = vector.broadcast %cst_12 : f32 to vector<8x128xf32>
    %25 = arith.mulf %24, %23 : vector<8x128xf32>
    %26 = math.tanh %10 : vector<8x128xf32>
    %27 = arith.mulf %25, %26 : vector<8x128xf32>
    %28 = arith.addf %18, %27 : vector<8x128xf32>
    %cst_13 = arith.constant 5.000000e-01 : f32
    %29 = vector.broadcast %cst_13 : f32 to vector<8x128xf32>
    %30 = arith.mulf %29, %9 : vector<8x128xf32>
    %31 = math.tanh %30 : vector<8x128xf32>
    %cst_14 = arith.constant 1.000000e+00 : f32
    %32 = vector.broadcast %cst_14 : f32 to vector<8x128xf32>
    %33 = arith.addf %31, %32 : vector<8x128xf32>
    %cst_15 = arith.constant 5.000000e-01 : f32
    %34 = vector.broadcast %cst_15 : f32 to vector<8x128xf32>
    %35 = arith.mulf %34, %33 : vector<8x128xf32>
    %36 = math.tanh %28 : vector<8x128xf32>
    %37 = arith.mulf %35, %36 : vector<8x128xf32>
    %c0_16 = arith.constant 0 : index
    %c0_17 = arith.constant 0 : index
    %38 = vector.load %arg4[%c0_16, %c0_17] : memref<8x128xf32, #tpu.memory_space<vmem>>, vector<8x128xf32>
    tpu.vector_store %arg4[%c0_16, %c0_17], %37 {strides = array<i32>} : memref<8x128xf32, #tpu.memory_space<vmem>>, vector<8x128xf32>,
    %c0_18 = arith.constant 0 : index
    %c0_19 = arith.constant 0 : index
    %39 = vector.load %arg5[%c0_18, %c0_19] : memref<8x128xf32, #tpu.memory_space<vmem>>, vector<8x128xf32>
    tpu.vector_store %arg5[%c0_18, %c0_19], %28 {strides = array<i32>} : memref<8x128xf32, #tpu.memory_space<vmem>>, vector<8x128xf32>,
    return
  }
}

</mosaic_0001>

<bundles_post_ra>
// kernel: tpu_custom_call.1
= control target key start
LH: loop header
LB: loop body
LE: loop exit
PB: predicated region body
PF: predicated region fallthrough
CT: control target
= control target key end

     0   :  { %11 = vsyncpa [#allocation3], 0  ;;  %s710_s0 = inlined_call_operand.hbm [shape: f32[8,192], index: 0, kind: input, shape index: {}]   ;;  %s711_s1 = inlined_call_operand.hbm [shape: f32[8,128], index: 1, kind: input, shape index: {}]   ;;  %s712_s2 = inlined_call_operand.hbm [shape: f32[192,512], index: 2, kind: input, shape index: {}]   ;;  %s713_s3 = inlined_call_operand.vmem [shape: f32[1,512], index: 3, kind: input, shape index: {}]   ;;  %s714_s4 = inlined_call_operand.hbm [shape: f32[8,128], index: 4, kind: output, shape index: {0}]   ;;  %s715_s5 = inlined_call_operand.hbm [shape: f32[8,128], index: 5, kind: output, shape index: {1}]  }
   0x1   :  { %12 = vsyncpa [#allocation6], 0 }
   0x2   :  { %13 = vsyncpa [#allocation4], 0 }
   0x3   :  { %14 = vsyncpa [#allocation10], 0  ;;  %s608_s18 = smov [#allocation5]   ;;  %s609_s20 = smov [#allocation2]  }
   0x4   :  { %s31_s19 = sshll.u32 %s608_s18, 4  ;;  %s21_s21 = sshll.u32 %s609_s20, 4  ;;  %s32_s19 = int_to_ptr.vmem [resolvable:$true] %s31_s19  ;;  %s22_s21 = int_to_ptr.vmem [resolvable:$true] %s21_s21 }
   0x5   :  { %s490_s24 = scalar_lea.hbm %s711_s1, 128 }
   0x6   :  { %p491_p0 = scmp.ne.s32.totalorder %s711_s1, %s490_s24  ;;  %p494_p1 = scmp.lt.u32.totalorder %s490_s24, %s711_s1 }
   0x8   :  { %p496_p2 = pnand %p494_p1, %p491_p0 }
   0xa   :  { %499 = shalt.err (!%p496_p2)
}
   0xb   :  { %s500_s29 = scalar_lea.vmem %s32_s19, 128  ;;  %p505_p4 = scmp.lt.s32.totalorder %s32_s19, %s32_s19 }
   0xc   :  { %p501_p3 = scmp.ne.s32.totalorder %s32_s19, %s500_s29  ;;  %p506_p5 = scmp.lt.s32.totalorder %s500_s29, %s500_s29 }
   0xe   :  { %p507_p6 = por %p506_p5, %p505_p4 }
  0x10   :  { %p508_p7 = pnand %p507_p6, %p501_p3 }
  0x12   :  { %511 = shalt.err (!%p508_p7)
}
  0x13   :  { %34 = dma.hbm_to_vmem [thread:$0]  %s711_s1, 128, %s32_s19, [#allocation6]  }
  0x14   :  { %s512_s9 = scalar_lea.hbm %s710_s0, 256 }
  0x15   :  { %p513_p8 = scmp.ne.s32.totalorder %s710_s0, %s512_s9  ;;  %p516_p9 = scmp.lt.u32.totalorder %s512_s9, %s710_s0 }
  0x17   :  { %p518_p10 = pnand %p516_p9, %p513_p8 }
  0x19   :  { %521 = shalt.err (!%p518_p10)
}
  0x1a   :  { %s522_s14 = scalar_lea.vmem %s22_s21, 256  ;;  %p527_p12 = scmp.lt.s32.totalorder %s22_s21, %s22_s21 }
  0x1b   :  { %p523_p11 = scmp.ne.s32.totalorder %s22_s21, %s522_s14  ;;  %p528_p13 = scmp.lt.s32.totalorder %s522_s14, %s522_s14 }
  0x1d   :  { %p529_p0 = por %p528_p13, %p527_p12 }
  0x1f   :  { %p530_p1 = pnand %p529_p0, %p523_p11 }
  0x21   :  { %533 = shalt.err (!%p530_p1)
}
  0x22   :  { %24 = dma.hbm_to_vmem [thread:$0]  %s710_s0, 256, %s22_s21, [#allocation3]  }
  0x23   :  { %s610_s16 = smov [#allocation7]   ;;  %s534_s20 = scalar_lea.hbm %s712_s2, 12288 }
  0x24   :  { %s40_s17 = sshll.u32 %s610_s16, 4  ;;  %p535_p2 = scmp.ne.s32.totalorder %s712_s2, %s534_s20  ;;  %s41_s17 = int_to_ptr.vmem [resolvable:$true] %s40_s17 }
  0x25   :  { %p538_p3 = scmp.lt.u32.totalorder %s534_s20, %s712_s2 }
  0x27   :  { %p540_p4 = pnand %p538_p3, %p535_p2 }
  0x29   :  { %543 = shalt.err (!%p540_p4)
}
  0x2a   :  { %s544_s26 = scalar_lea.vmem %s41_s17, 12288  ;;  %p549_p6 = scmp.lt.s32.totalorder %s41_s17, %s41_s17 }
  0x2b   :  { %p545_p5 = scmp.ne.s32.totalorder %s41_s17, %s544_s26  ;;  %p550_p7 = scmp.lt.s32.totalorder %s544_s26, %s544_s26 }
  0x2d   :  { %p551_p8 = por %p550_p7, %p549_p6 }
  0x2f   :  { %p552_p9 = pnand %p551_p8, %p545_p5 }
  0x31   :  { %555 = shalt.err (!%p552_p9)
}
  0x32   :  { %s611_s0 = smov 512   ;;  %s612_s21 = smov 32  }
  0x33   :  { %46 = dma.hbm_to_vmem [thread:$0]  %s712_s2, 12288, %s41_s17, [#allocation6], %s611_s0, %s611_s0, %s612_s21  }
  0x34   :  { %600 = dma.done.wait [#allocation3], 256  }
  0x35   :  { %601 = vsyncadd [#allocation3], 4294967040 }
  0x36   :  { %602 = dma.done.wait [#allocation6], 12416  }
  0x37   :  { %603 = vsyncadd [#allocation6], 4294954880  ;;  %v62_v0 = vld [vmem:[#allocation7 + $0x8] sm:$0xff]  ;;  %v61_v2 = vld [vmem:[#allocation7] sm:$0xff]  ;;  %vm179_vm0 = vcmask 523264  }
  0x38   :  { %v66_v1 = vld [vmem:[#allocation7 + $0x28] sm:$0xff]  ;;  %v65_v4 = vld [vmem:[#allocation7 + $0x20] sm:$0xff]  ;;  %v64_v11 = vld [vmem:[#allocation7 + $0x18] sm:$0xff] }
  0x39   :  { %v377_v3 = vpack.c.bf16 %v66_v1, %v62_v0  ;;  %v70_v5 = vld [vmem:[#allocation7 + $0x48] sm:$0xff]  ;;  %v379_v7 = vpack.c.bf16 %v65_v4, %v61_v2  ;;  %v69_v9 = vld [vmem:[#allocation7 + $0x40] sm:$0xff]  ;;  %v68_v12 = vld [vmem:[#allocation7 + $0x38] sm:$0xff] }
  0x3a   :  { %v74_v6 = vld [vmem:[#allocation7 + $0x68] sm:$0xff]  ;;  %v73_v10 = vld [vmem:[#allocation7 + $0x60] sm:$0xff]  ;;  %v63_v13 = vld [vmem:[#allocation7 + $0x10] sm:$0xff]  ;;  %v425_v16 = vpack.c.bf16 %v68_v12, %v64_v11 }
  0x3b   :  { %v381_v8 = vpack.c.bf16 %v74_v6, %v70_v5  ;;  %378 = vmatprep.subr.bf16.mxu0 %v377_v3  ;;  %v67_v14 = vld [vmem:[#allocation7 + $0x30] sm:$0xff]  ;;  %v383_v15 = vpack.c.bf16 %v73_v10, %v69_v9  ;;  %v78_v18 = vld [vmem:[#allocation7 + $0x88] sm:$0xff]  ;;  %v77_v20 = vld [vmem:[#allocation7 + $0x80] sm:$0xff] }
  0x3c   :  { %380 = vmatpush1.bf16.msra.mxu0 %v379_v7  ;;  %v427_v17 = vpack.c.bf16 %v67_v14, %v63_v13  ;;  %v82_v19 = vld [vmem:[#allocation7 + $0xa8] sm:$0xff]  ;;  %v81_v22 = vld [vmem:[#allocation7 + $0xa0] sm:$0xff]  ;;  %v72_v23 = vld [vmem:[#allocation7 + $0x58] sm:$0xff]  ;;  %426 = vmatprep.subr.bf16.mxu1 %v425_v16 }
  0x3d   :  { %382 = vmatprep.subr.bf16.mxu0 %v381_v8  ;;  %v385_v21 = vpack.c.bf16 %v82_v19, %v78_v18  ;;  %v76_v24 = vld [vmem:[#allocation7 + $0x78] sm:$0xff]  ;;  %v71_v26 = vld [vmem:[#allocation7 + $0x50] sm:$0xff]  ;;  %v86_v28 = vld [vmem:[#allocation7 + $0xc8] sm:$0xff]  ;;  %v387_v31 = vpack.c.bf16 %v81_v22, %v77_v20 }
  0x3e   :  { %v429_v25 = vpack.c.bf16 %v76_v24, %v72_v23  ;;  %v75_v27 = vld [vmem:[#allocation7 + $0x70] sm:$0xff]  ;;  %428 = vmatpush1.bf16.msra.mxu1 %v427_v17  ;;  %v90_v30 = vld [vmem:[#allocation7 + $0xe8] sm:$0xff]  ;;  %v80_v32 = vld [vmem:[#allocation7 + $0x98] sm:$0xff] }
  0x3f   :  { %v431_v29 = vpack.c.bf16 %v75_v27, %v71_v26  ;;  %v84_v33 = vld [vmem:[#allocation7 + $0xb8] sm:$0xff]  ;;  %v79_v34 = vld [vmem:[#allocation7 + $0x90] sm:$0xff]  ;;  %v389_v35 = vpack.c.bf16 %v90_v30, %v86_v28  ;;  %v85_v36 = vld [vmem:[#allocation7 + $0xc0] sm:$0xff] }
  0x40   :  { %384 = vmatpush1.bf16.msra.mxu0 %v383_v15  ;;  %430 = vmatprep.subr.bf16.mxu1 %v429_v25  ;;  %v89_v37 = vld [vmem:[#allocation7 + $0xe0] sm:$0xff]  ;;  %v433_v38 = vpack.c.bf16 %v84_v33, %v80_v32  ;;  %v83_v39 = vld [vmem:[#allocation7 + $0xb0] sm:$0xff]  ;;  %v94_v40 = vld [vmem:[#allocation7 + $0x108] sm:$0xff] }
  0x41   :  { %386 = vmatprep.subr.bf16.mxu0 %v385_v21  ;;  %v98_v41 = vld [vmem:[#allocation7 + $0x128] sm:$0xff]  ;;  %v88_v42 = vld [vmem:[#allocation7 + $0xd8] sm:$0xff]  ;;  %v435_v43 = vpack.c.bf16 %v83_v39, %v79_v34  ;;  %v391_v45 = vpack.c.bf16 %v89_v37, %v85_v36  ;;  %v93_v46 = vld [vmem:[#allocation7 + $0x100] sm:$0xff] }
  0x42   :  { %432 = vmatpush1.bf16.msra.mxu1 %v431_v29  ;;  %v92_v44 = vld [vmem:[#allocation7 + $0xf8] sm:$0xff]  ;;  %v87_v48 = vld [vmem:[#allocation7 + $0xd0] sm:$0xff]  ;;  %v393_v50 = vpack.c.bf16 %v98_v41, %v94_v40  ;;  %v97_v51 = vld [vmem:[#allocation7 + $0x120] sm:$0xff] }
  0x43   :  { %434 = vmatprep.subr.bf16.mxu1 %v433_v38  ;;  %v437_v47 = vpack.c.bf16 %v92_v44, %v88_v42  ;;  %v91_v49 = vld [vmem:[#allocation7 + $0xf0] sm:$0xff]  ;;  %v96_v52 = vld [vmem:[#allocation7 + $0x118] sm:$0xff]  ;;  %v102_v54 = vld [vmem:[#allocation7 + $0x148] sm:$0xff]  ;;  %v395_v57 = vpack.c.bf16 %v97_v51, %v93_v46 }
  0x44   :  { %388 = vmatpush1.bf16.msra.mxu0 %v387_v31  ;;  %v100_v53 = vld [vmem:[#allocation7 + $0x138] sm:$0xff]  ;;  %v106_v55 = vld [vmem:[#allocation7 + $0x168] sm:$0xff]  ;;  %v439_v56 = vpack.c.bf16 %v91_v49, %v87_v48  ;;  %v101_v58 = vld [vmem:[#allocation7 + $0x140] sm:$0xff] }
  0x45   :  { %390 = vmatprep.subr.bf16.mxu0 %v389_v35  ;;  %v441_v59 = vpack.c.bf16 %v100_v53, %v96_v52  ;;  %v95_v60 = vld [vmem:[#allocation7 + $0x110] sm:$0xff]  ;;  %v397_v62 = vpack.c.bf16 %v106_v55, %v102_v54  ;;  %v105_v63 = vld [vmem:[#allocation7 + $0x160] sm:$0xff]  ;;  %v104_v0 = vld [vmem:[#allocation7 + $0x158] sm:$0xff] }
  0x46   :  { %436 = vmatpush1.bf16.msra.mxu1 %v435_v43  ;;  %v99_v61 = vld [vmem:[#allocation7 + $0x130] sm:$0xff]  ;;  %v108_v1 = vld [vmem:[#allocation7 + $0x178] sm:$0xff]  ;;  %v110_v2 = vld [vmem:[#allocation7 + $0x188] sm:$0xff]  ;;  %v399_v5 = vpack.c.bf16 %v105_v63, %v101_v58 }
  0x47   :  { %438 = vmatprep.subr.bf16.mxu1 %v437_v47  ;;  %v114_v3 = vld [vmem:[#allocation7 + $0x1a8] sm:$0xff]  ;;  %v443_v4 = vpack.c.bf16 %v99_v61, %v95_v60  ;;  %v109_v6 = vld [vmem:[#allocation7 + $0x180] sm:$0xff]  ;;  %v445_v7 = vpack.c.bf16 %v108_v1, %v104_v0  ;;  %v103_v8 = vld [vmem:[#allocation7 + $0x150] sm:$0xff] }
  0x48   :  { %392 = vmatpush1.bf16.msra.mxu0 %v391_v45  ;;  %v107_v9 = vld [vmem:[#allocation7 + $0x170] sm:$0xff]  ;;  %v401_v10 = vpack.c.bf16 %v114_v3, %v110_v2  ;;  %v113_v11 = vld [vmem:[#allocation7 + $0x1a0] sm:$0xff]  ;;  %v112_v12 = vld [vmem:[#allocation7 + $0x198] sm:$0xff] }
  0x49   :  { %394 = vmatprep.subr.bf16.mxu0 %v393_v50  ;;  %v116_v13 = vld [vmem:[#allocation7 + $0x1b8] sm:$0xff]  ;;  %v118_v14 = vld [vmem:[#allocation7 + $0x1c8] sm:$0xff]  ;;  %v447_v16 = vpack.c.bf16 %v107_v9, %v103_v8  ;;  %v403_v17 = vpack.c.bf16 %v113_v11, %v109_v6  ;;  %v117_v18 = vld [vmem:[#allocation7 + $0x1c0] sm:$0xff] }
  0x4a   :  { %440 = vmatpush1.bf16.msra.mxu1 %v439_v56  ;;  %v122_v15 = vld [vmem:[#allocation7 + $0x1e8] sm:$0xff]  ;;  %v449_v19 = vpack.c.bf16 %v116_v13, %v112_v12  ;;  %v111_v20 = vld [vmem:[#allocation7 + $0x190] sm:$0xff]  ;;  %v121_v23 = vld [vmem:[#allocation7 + $0x1e0] sm:$0xff] }
  0x4b   :  { %442 = vmatprep.subr.bf16.mxu1 %v441_v59  ;;  %v115_v21 = vld [vmem:[#allocation7 + $0x1b0] sm:$0xff]  ;;  %v405_v22 = vpack.c.bf16 %v122_v15, %v118_v14  ;;  %v120_v24 = vld [vmem:[#allocation7 + $0x1d8] sm:$0xff]  ;;  %v126_v26 = vld [vmem:[#allocation7 + $0x208] sm:$0xff]  ;;  %v407_v29 = vpack.c.bf16 %v121_v23, %v117_v18  ;;  %v159_v18 = vlaneseq }
  0x4c   :  { %396 = vmatpush1.bf16.msra.mxu0 %v395_v57  ;;  %v124_v25 = vld [vmem:[#allocation7 + $0x1f8] sm:$0xff]  ;;  %v130_v27 = vld [vmem:[#allocation7 + $0x228] sm:$0xff]  ;;  %v451_v28 = vpack.c.bf16 %v115_v21, %v111_v20  ;;  %v125_v30 = vld [vmem:[#allocation7 + $0x200] sm:$0xff] }
  0x4d   :  { %398 = vmatprep.subr.bf16.mxu0 %v397_v62  ;;  %v453_v31 = vpack.c.bf16 %v124_v25, %v120_v24  ;;  %v119_v32 = vld [vmem:[#allocation7 + $0x1d0] sm:$0xff]  ;;  %v409_v34 = vpack.c.bf16 %v130_v27, %v126_v26  ;;  %v129_v35 = vld [vmem:[#allocation7 + $0x220] sm:$0xff]  ;;  %v128_v36 = vld [vmem:[#allocation7 + $0x218] sm:$0xff] }
  0x4e   :  { %444 = vmatpush1.bf16.msra.mxu1 %v443_v4  ;;  %v123_v33 = vld [vmem:[#allocation7 + $0x1f0] sm:$0xff]  ;;  %v132_v37 = vld [vmem:[#allocation7 + $0x238] sm:$0xff]  ;;  %v134_v38 = vld [vmem:[#allocation7 + $0x248] sm:$0xff]  ;;  %v411_v42 = vpack.c.bf16 %v129_v35, %v125_v30 }
  0x4f   :  { %446 = vmatprep.subr.bf16.mxu1 %v445_v7  ;;  %v138_v39 = vld [vmem:[#allocation7 + $0x268] sm:$0xff]  ;;  %v60_v40 = vld [vmem:[#allocation2 + $0x8] sm:$0xff]  ;;  %v455_v41 = vpack.c.bf16 %v123_v33, %v119_v32  ;;  %v133_v43 = vld [vmem:[#allocation7 + $0x240] sm:$0xff]  ;;  %v457_v44 = vpack.c.bf16 %v132_v37, %v128_v36 }
  0x50   :  { %400 = vmatpush1.bf16.msra.mxu0 %v399_v5  ;;  %375 = vmatprep.mubr.msk.f32.mxu0 %vm179_vm0, %v60_v40  ;;  %v127_v45 = vld [vmem:[#allocation7 + $0x210] sm:$0xff]  ;;  %v413_v47 = vpack.c.bf16 %v138_v39, %v134_v38  ;;  %v137_v48 = vld [vmem:[#allocation7 + $0x260] sm:$0xff]  ;;  %v136_v49 = vld [vmem:[#allocation7 + $0x258] sm:$0xff] }
  0x51   :  { %402 = vmatprep.subr.bf16.mxu0 %v401_v10  ;;  %v131_v46 = vld [vmem:[#allocation7 + $0x230] sm:$0xff]  ;;  %v140_v50 = vld [vmem:[#allocation7 + $0x278] sm:$0xff]  ;;  %376 = vmatprep.mubr.msk.f32.mxu1 %vm179_vm0, %v60_v40  ;;  %v142_v51 = vld [vmem:[#allocation7 + $0x288] sm:$0xff]  ;;  %v415_v54 = vpack.c.bf16 %v137_v48, %v133_v43 }
  0x52   :  { %448 = vmatpush1.bf16.msra.mxu1 %v447_v16  ;;  %v146_v52 = vld [vmem:[#allocation7 + $0x2a8] sm:$0xff]  ;;  %v459_v53 = vpack.c.bf16 %v131_v46, %v127_v45  ;;  %v141_v55 = vld [vmem:[#allocation7 + $0x280] sm:$0xff]  ;;  %v461_v56 = vpack.c.bf16 %v140_v50, %v136_v49  ;;  %v135_v57 = vld [vmem:[#allocation7 + $0x250] sm:$0xff] }
  0x53   :  { %450 = vmatprep.subr.bf16.mxu1 %v449_v19  ;;  %v139_v58 = vld [vmem:[#allocation7 + $0x270] sm:$0xff]  ;;  %v417_v59 = vpack.c.bf16 %v146_v52, %v142_v51  ;;  %v145_v60 = vld [vmem:[#allocation7 + $0x2a0] sm:$0xff]  ;;  %v144_v61 = vld [vmem:[#allocation7 + $0x298] sm:$0xff]  ;;  %v160_v19 = vshrl.u32 %v159_v18, 7 }
  0x54   :  { %404 = vmatpush1.bf16.msra.mxu0 %v403_v17  ;;  %v148_v62 = vld [vmem:[#allocation7 + $0x2b8] sm:$0xff]  ;;  %v150_v63 = vld [vmem:[#allocation7 + $0x2c8] sm:$0xff]  ;;  %v463_v1 = vpack.c.bf16 %v139_v58, %v135_v57  ;;  %v419_v2 = vpack.c.bf16 %v145_v60, %v141_v55  ;;  %v149_v3 = vld [vmem:[#allocation7 + $0x2c0] sm:$0xff] }
  0x55   :  { %406 = vmatprep.subr.bf16.mxu0 %v405_v22  ;;  %v154_v0 = vld [vmem:[#allocation7 + $0x2e8] sm:$0xff]  ;;  %v465_v4 = vpack.c.bf16 %v148_v62, %v144_v61  ;;  %v143_v5 = vld [vmem:[#allocation7 + $0x290] sm:$0xff]  ;;  %v153_v8 = vld [vmem:[#allocation7 + $0x2e0] sm:$0xff]  ;;  %v161_v20 = vsub.s32 0, %v160_v19  ;;  %v165_v22 = vsub.s32 1, %v160_v19  ;;  %v173_v24 = vsub.s32 3, %v160_v19 }
  0x56   :  { %452 = vmatpush1.bf16.msra.mxu1 %v451_v28  ;;  %v147_v6 = vld [vmem:[#allocation7 + $0x2b0] sm:$0xff]  ;;  %v421_v7 = vpack.c.bf16 %v154_v0, %v150_v63  ;;  %v152_v9 = vld [vmem:[#allocation7 + $0x2d8] sm:$0xff]  ;;  %v423_v12 = vpack.c.bf16 %v153_v8, %v149_v3  ;;  %v59_v17 = vld [vmem:[#allocation2] sm:$0xff] }
  0x57   :  { %454 = vmatprep.subr.bf16.mxu1 %v453_v31  ;;  %v156_v10 = vld [vmem:[#allocation7 + $0x2f8] sm:$0xff]  ;;  %v467_v11 = vpack.c.bf16 %v147_v6, %v143_v5  ;;  %v151_v14 = vld [vmem:[#allocation7 + $0x2d0] sm:$0xff]  ;;  %v157_v21 = vld [vmem:[%s713_s3] sm:$0xf]  ;;  %s613_s3 = smov [#allocation9]  }
  0x58   :  { %408 = vmatpush1.bf16.msra.mxu0 %v407_v29  ;;  %v469_v13 = vpack.c.bf16 %v156_v10, %v152_v9  ;;  %v155_v15 = vld [vmem:[#allocation7 + $0x2f0] sm:$0xff]  ;;  %v162_v23 = vrot.slane %v157_v21, %v161_v20  ;;  %v166_v25 = vrot.slane %v157_v21, %v165_v22  ;;  %v169_v29 = vsub.s32 2, %v160_v19  ;;  %v58_v43 = vld [vmem:[#allocation5] sm:$0xff]  ;;  %s361_s30 = sshll.u32 %s613_s3, 4  ;;  %s362_s30 = int_to_ptr.vmem [resolvable:$true] %s361_s30 }
  0x59   :  { %410 = vmatprep.subr.bf16.mxu0 %v409_v34  ;;  %v471_v16 = vpack.c.bf16 %v155_v15, %v151_v14  ;;  %v174_v30 = vrot.slane %v157_v21, %v173_v24  ;;  %s556_s6 = scalar_lea.vmem %s362_s30, 128  ;;  %p561_p11 = scmp.lt.s32.totalorder %s362_s30, %s362_s30 }
  0x5a   :  { %456 = vmatpush1.bf16.msra.mxu1 %v455_v41  ;;  %v170_v36 = vrot.slane %v157_v21, %v169_v29  ;;  %p557_p10 = scmp.ne.s32.totalorder %s362_s30, %s556_s6  ;;  %p562_p12 = scmp.lt.s32.totalorder %s556_s6, %s556_s6 }
  0x5b   :  { %458 = vmatprep.subr.bf16.mxu1 %v457_v44 }
  0x5c   :  { %412 = vmatpush1.bf16.msra.mxu0 %v411_v42  ;;  %p563_p13 = por %p562_p12, %p561_p11 }
  0x5d   :  { %414 = vmatprep.subr.bf16.mxu0 %v413_v47 }
  0x5e   :  { %460 = vmatpush1.bf16.msra.mxu1 %v459_v53  ;;  %p564_p0 = pnand %p563_p13, %p557_p10 }
  0x5f   :  { %462 = vmatprep.subr.bf16.mxu1 %v461_v56 }
  0x60   :  { %416 = vmatpush1.bf16.msra.mxu0 %v415_v54 }
  0x61   :  { %418 = vmatprep.subr.bf16.mxu0 %v417_v59 }
  0x62   :  { %464 = vmatpush1.bf16.msra.mxu1 %v463_v1 }
  0x63   :  { %466 = vmatprep.subr.bf16.mxu1 %v465_v4 }
  0x64   :  { %420 = vmatpush1.bf16.msra.mxu0 %v419_v2 }
  0x65   :  { %422 = vmatprep.subr.bf16.mxu0 %v421_v7 }
  0x66   :  { %468 = vmatpush1.bf16.msra.mxu1 %v467_v11 }
  0x67   :  { %470 = vmatprep.subr.bf16.mxu1 %v469_v13 }
  0x68   :  { %424 = vmatpush1.bf16.msra.mxu0 %v423_v12 }
  0x6a   :  { %472 = vmatpush1.bf16.msra.mxu1 %v471_v16 }
  0x6b   :  { %248 = vmatmul.mubr.f32.vlgmr.msra.gmra.mrb[0].mxu0 %v59_v17 }
  0x6d   :  { %319 = vmatmul.mubr.f32.vlgmr.msra.gmra.mrb[0].mxu1 %v59_v17 }
 0x13e   :  { %v249_v26 = vpop.f32.mrb[0].mxu0 }
 0x13f   :  { %v250_v27 = vadd.f32 %v249_v26, %v162_v23  ;;  %v251_v28 = vpop.f32.mrb[1].mxu0 }
 0x140   :  { %v252_v31 = vadd.f32 %v251_v28, %v166_v25  ;;  %v320_v33 = vpop.f32.mrb[0].mxu1 }
 0x141   :  { %v325_v32 = vmul.f32 0.5, %v250_v27  ;;  %v322_v35 = vpop.f32.mrb[1].mxu1  ;;  %v321_v38 = vadd.f32 %v320_v33, %v170_v36 }
 0x142   :  { %v330_v34 = vmul.f32 0.5, %v252_v31  ;;  %v323_v37 = vadd.f32 %v322_v35, %v174_v30 }
 0x143   :  { %480 = vtanh.f32 %v325_v32  ;;  %v337_v39 = vmul.f32 0.5, %v321_v38 }
 0x144   :  { %482 = vtanh.f32 %v330_v34 }
 0x145   :  { %484 = vtanh.f32 %v323_v37 }
 0x146   :  { %486 = vtanh.f32 %v337_v39 }
 0x14d   :  { %v481_v40 = vpop.eup %480 }
 0x14e   :  { %v483_v41 = vpop.eup %482  ;;  %v327_v42 = vadd.f32 1.0, %v481_v40 }
 0x14f   :  { %v332_v44 = vadd.f32 1.0, %v483_v41  ;;  %v485_v45 = vpop.eup %484 }
 0x150   :  { %v328_v46 = vmul.f32 0.5, %v327_v42 }
 0x151   :  { %v333_v47 = vmul.f32 0.5, %v332_v44 }
 0x152   :  { %v329_v48 = vmul.f32 %v328_v46, %v58_v43 }
 0x153   :  { %v335_v49 = vmul.f32 %v485_v45, %v333_v47 }
 0x155   :  { %v336_v50 = vadd.f32 %v335_v49, %v329_v48 }
 0x157   :  { %344 = vst [vmem:[#allocation9] sm:$0xff] %v336_v50  ;;  %488 = vtanh.f32 %v336_v50 }
 0x158   :  { %567 = shalt.err (!%p564_p0)
}
 0x159   :  { %s568_s9 = scalar_lea.hbm %s715_s5, 128 }
 0x15a   :  { %p569_p1 = scmp.ne.s32.totalorder %s715_s5, %s568_s9  ;;  %p572_p2 = scmp.lt.u32.totalorder %s568_s9, %s715_s5 }
 0x15c   :  { %p574_p3 = pnand %p572_p2, %p569_p1 }
 0x15e   :  { %577 = shalt.err (!%p574_p3)
}
 0x15f   :  { %364 = dma.vmem_to_hbm [thread:$0]  %s362_s30, 128, %s715_s5, [#allocation10]   ;;  %v487_v51 = vpop.eup %486 }
 0x160   :  { %v339_v52 = vadd.f32 1.0, %v487_v51  ;;  %s614_s15 = smov [#allocation8]  }
 0x161   :  { %s351_s16 = sshll.u32 %s614_s15, 4  ;;  %v489_v54 = vpop.eup %488  ;;  %s352_s16 = int_to_ptr.vmem [resolvable:$true] %s351_s16 }
 0x162   :  { %v340_v53 = vmul.f32 0.5, %v339_v52  ;;  %s578_s17 = scalar_lea.vmem %s352_s16, 128  ;;  %p583_p5 = scmp.lt.s32.totalorder %s352_s16, %s352_s16 }
 0x163   :  { %p579_p4 = scmp.ne.s32.totalorder %s352_s16, %s578_s17  ;;  %p584_p6 = scmp.lt.s32.totalorder %s578_s17, %s578_s17 }
 0x164   :  { %v342_v55 = vmul.f32 %v489_v54, %v340_v53 }
 0x165   :  { %p585_p7 = por %p584_p6, %p583_p5 }
 0x166   :  { %343 = vst [vmem:[#allocation8] sm:$0xff] %v342_v55 }
 0x167   :  { %p586_p8 = pnand %p585_p7, %p579_p4 }
 0x169   :  { %589 = shalt.err (!%p586_p8)
}
 0x16a   :  { %s590_s5 = scalar_lea.hbm %s714_s4, 128 }
 0x16b   :  { %p591_p9 = scmp.ne.s32.totalorder %s714_s4, %s590_s5  ;;  %p594_p10 = scmp.lt.u32.totalorder %s590_s5, %s714_s4 }
 0x16d   :  { %p596_p11 = pnand %p594_p10, %p591_p9 }
 0x16f   :  { %599 = shalt.err (!%p596_p11)
}
 0x170   :  { %354 = dma.vmem_to_hbm [thread:$0]  %s352_s16, 128, %s714_s4, [#allocation4]  }
 0x171   :  { %604 = dma.done.wait [#allocation4], 128  }
 0x172   :  { %605 = vsyncadd [#allocation4], 4294967168 }
 0x173   :  { %606 = dma.done.wait [#allocation10], 128  }
 0x174   :  { %607 = vsyncadd [#allocation10], 4294967168 }
 0x175   :  { %371 = vsyncpa [#allocation3], 1 }
 0x176   :  { %372 = vsyncpa [#allocation6], 1 }
 0x177   :  { %373 = vsyncpa [#allocation4], 1 }
 0x178   :  { %374 = vsyncpa [#allocation10], 1 }

</bundles_post_ra>
